<compile_context>
chip_gen: v6e
topology: v6e:2x2x1
jax: 0.10.0
libtpu: 0.0.40
codegen_flags: <defaults>
</compile_context>

<pallas_src>
import math

import jax
import jax.numpy as jnp
from jax.experimental import pallas as pl
from jax.experimental.pallas import tpu as pltpu


# ---------------------------------------------------------------------------
# Model hyper-parameters (small, consistent with the module's forward).
# ---------------------------------------------------------------------------
B, S, D, H = 2, 8, 32, 4
DH = D // H
D_FF = 4 * D
EPS = 1e-6
MXU_DTYPE = jnp.bfloat16     # operand dtype for matmuls (accumulate in f32)


def _layernorm(v, alpha, bias):
    # Matches PyTorch "Normalization": alpha*(x-mean)/(std+eps)+bias, where
    # torch.std is the UNBIASED estimator (divide by N-1) and eps is added to
    # std (not var). Keep it this way for parity with the module.
    mean = jnp.mean(v, axis=-1, keepdims=True)
    c = v - mean
    var = jnp.sum(c * c, axis=-1, keepdims=True) * (1.0 / (D - 1))
    inv = pl.reciprocal(jnp.sqrt(var) + EPS, approx=True)     # EUP, frees VALU
    return alpha * c * inv + bias


def encoder_layer_kernel(
    x_ref, mask_ref,
    a1_ref, g1_ref,                 # norm_1 alpha, bias          (1, D)
    wqkv_ref, bqkv_ref,             # fused per-head QKV           (H, D, 3*DH), (H, 1, 3*DH)
    wo_ref, bo_ref,                 # out proj (per-head rows)     (H, DH, D), (1, D)
    a2_ref, g2_ref,                 # norm_2 alpha, bias
    w1_ref, bf1_ref, w2_ref, bf2_ref,   # feedforward
    o_ref,
):
    x = x_ref[...].astype(jnp.float32)          # (S, D)  -- one batch element
    mask = mask_ref[...]                        # (1, S)  1 = keep, 0 = masked

    # ---------------- LayerNorm 1 ----------------
    y = _layernorm(x, a1_ref[...], g1_ref[...])

    # ------------- fused per-head Q/K/V projection -------------
    # One heads-batched matmul replaces 3 projections + per-head lane slicing
    # + concat; heads live on the leading (batch) axis so no relayout loop.
    y_b = jnp.broadcast_to(y.astype(MXU_DTYPE), (H, S, D))
    qkv = jnp.einsum('hsd,hde->hse', y_b, wqkv_ref[...],
                     preferred_element_type=jnp.float32) + bqkv_ref[...]  # (H,S,3*DH)
    q = qkv[:, :, 0:DH]
    k = qkv[:, :, DH:2 * DH]
    v = qkv[:, :, 2 * DH:3 * DH]

    # ------------- attention, all heads in one batched contraction -------------
    score_bias = jnp.where(mask == 0.0, jnp.float32(-1e9), jnp.float32(0.0))  # (1,S)
    scores = jnp.einsum('hqd,hkd->hqk',
                        q.astype(MXU_DTYPE), k.astype(MXU_DTYPE),
                        preferred_element_type=jnp.float32)                   # (H,S,S)
    scores = scores * jnp.float32(1.0 / math.sqrt(DH)) + score_bias[None, :, :]

    m = jnp.max(scores, axis=-1, keepdims=True)
    e = jnp.exp(scores - m)
    p = e * pl.reciprocal(jnp.sum(e, axis=-1, keepdims=True), approx=True)

    attn_h = jnp.einsum('hqk,hkd->hqd',
                        p.astype(MXU_DTYPE), v.astype(MXU_DTYPE),
                        preferred_element_type=jnp.float32)                   # (H,S,DH)

    # Output projection folded per head; the head-concat disappears into a
    # cheap major-axis sum (no lane repacking).
    proj = jnp.einsum('hqd,hdo->hqo',
                      attn_h.astype(MXU_DTYPE), wo_ref[...],
                      preferred_element_type=jnp.float32)                     # (H,S,D)
    attn = jnp.sum(proj, axis=0) + bo_ref[...]

    x = x + attn                                                              # residual 1

    # ---------------- LayerNorm 2 + FeedForward ----------------
    y2 = _layernorm(x, a2_ref[...], g2_ref[...])
    hdn = jnp.dot(y2.astype(MXU_DTYPE), w1_ref[...],
                  preferred_element_type=jnp.float32) + bf1_ref[...]
    hdn = jnp.maximum(hdn, 0.0)
    ff = jnp.dot(hdn.astype(MXU_DTYPE), w2_ref[...],
                 preferred_element_type=jnp.float32) + bf2_ref[...]

    # TODO(synk): output is only D=32 lanes wide (masked stores); a lane-dense
    # (B, S*D) store would need an in-kernel (8,32)->(2,128) relayout that
    # costs about what it saves at this size -- revisit at scaled sizes.
    o_ref[...] = x + ff                                                       # residual 2


def encoder_layer(x, mask, params):
    (a1, g1, wq, bq, wk, bk, wv, bv, wo, bo, a2, g2, w1, bf1, w2, bf2) = params

    # ---- host-side weight repacking (free XLA ops, outside the kernel) ----
    def per_head_cols(w):            # (D, D) -> (H, D, DH): head h = cols h*DH:(h+1)*DH
        return w.reshape(D, H, DH).transpose(1, 0, 2)

    w_qkv = jnp.concatenate(
        [per_head_cols(wq), per_head_cols(wk), per_head_cols(wv)], axis=-1
    ).astype(MXU_DTYPE)                                            # (H, D, 3*DH)
    b_qkv = jnp.concatenate(
        [bq.reshape(H, 1, DH), bk.reshape(H, 1, DH), bv.reshape(H, 1, DH)], axis=-1
    ).astype(jnp.float32)                                          # (H, 1, 3*DH)
    wo_h = wo.reshape(H, DH, D).astype(MXU_DTYPE)                  # head h = rows h*DH:(h+1)*DH
    w1_c = w1.astype(MXU_DTYPE)
    w2_c = w2.astype(MXU_DTYPE)

    # Weights/biases: full-array blocks with constant index maps -> VMEM
    # resident across grid steps (no re-DMA; block index never changes).
    def full_spec(a):
        n = a.ndim
        return pl.BlockSpec(a.shape, lambda b, _n=n: (0,) * _n)

    weights = (a1, g1, w_qkv, b_qkv, wo_h, bo, a2, g2, w1_c, bf1, w2_c, bf2)
    in_specs = [
        pl.BlockSpec((None, S, D), lambda b: (b, 0, 0)),   # x: one batch element per program
        pl.BlockSpec((None, 1, S), lambda b: (b, 0, 0)),   # mask
    ] + [full_spec(a) for a in weights]

    return pl.pallas_call(
        encoder_layer_kernel,
        out_shape=jax.ShapeDtypeStruct((B, S, D), jnp.float32),
        grid=(B,),
        in_specs=in_specs,
        out_specs=pl.BlockSpec((None, S, D), lambda b: (b, 0, 0)),
        compiler_params=pltpu.CompilerParams(
            dimension_semantics=("parallel",)),   # batch axis shards across v7x's 2 TCs
    )(x, mask, *weights)


# ---------------------------------------------------------------------------
# Pure-JAX f32 reference (PyTorch semantics) for a correctness check.
# ---------------------------------------------------------------------------
def encoder_layer_ref(x, mask, params):
    (a1, g1, wq, bq, wk, bk, wv, bv, wo, bo, a2, g2, w1, bf1, w2, bf2) = params

    def ln(v, alpha, bias):
        mean = jnp.mean(v, axis=-1, keepdims=True)
        var = jnp.sum((v - mean) ** 2, axis=-1, keepdims=True) / (D - 1)
        return alpha * (v - mean) / (jnp.sqrt(var) + EPS) + bias

    y = ln(x, a1, g1)
    q = (y @ wq + bq).reshape(B, S, H, DH).transpose(0, 2, 1, 3)
    k = (y @ wk + bk).reshape(B, S, H, DH).transpose(0, 2, 1, 3)
    v = (y @ wv + bv).reshape(B, S, H, DH).transpose(0, 2, 1, 3)
    scores = jnp.einsum('bhqd,bhkd->bhqk', q, k) / math.sqrt(DH)
    scores = jnp.where(mask[:, None, :, :] == 0, -1e9, scores)
    m = jnp.max(scores, axis=-1, keepdims=True)
    e = jnp.exp(scores - m)
    p = e / jnp.sum(e, axis=-1, keepdims=True)
    out = jnp.einsum('bhqk,bhkd->bhqd', p, v).transpose(0, 2, 1, 3).reshape(B, S, D)
    x = x + (out @ wo + bo)
    y2 = ln(x, a2, g2)
    ff = jnp.maximum(y2 @ w1 + bf1, 0.0) @ w2 + bf2
    return x + ff


def init_params(key):
    ks = jax.random.split(key, 6)

    def lin(k, fan_in, fan_out):
        lim = 1.0 / math.sqrt(fan_in)
        kw, kb = jax.random.split(k)
        w = jax.random.uniform(kw, (fan_in, fan_out), jnp.float32, -lim, lim)
        b = jax.random.uniform(kb, (1, fan_out), jnp.float32, -lim, lim)
        return w, b

    a1 = jnp.ones((1, D), jnp.float32)
    g1 = jnp.zeros((1, D), jnp.float32)
    a2 = jnp.ones((1, D), jnp.float32)
    g2 = jnp.zeros((1, D), jnp.float32)
    wq, bq = lin(ks[0], D, D)
    wk, bk = lin(ks[1], D, D)
    wv, bv = lin(ks[2], D, D)
    wo, bo = lin(ks[3], D, D)
    w1, bf1 = lin(ks[4], D, D_FF)
    w2, bf2 = lin(ks[5], D_FF, D)
    return (a1, g1, wq, bq, wk, bk, wv, bv, wo, bo, a2, g2, w1, bf1, w2, bf2)


if __name__ == "__main__":
    key = jax.random.PRNGKey(0)
    kx, kp = jax.random.split(key)
    x = jax.random.normal(kx, (B, S, D), jnp.float32)

    # mask: 1 = attend, 0 = masked out (variable "lengths" per batch element;
    # no fully-masked query rows, same caveat as the PyTorch module).
    lengths = jnp.array([S, S - 3], jnp.int32)
    mask = (jnp.arange(S)[None, :] < lengths[:, None]).astype(jnp.float32)
    mask = mask.reshape(B, 1, S)

    params = init_params(kp)

    out = jax.block_until_ready(encoder_layer(x, mask, params))
    ref = encoder_layer_ref(x, mask, params)

    assert out.shape == (B, S, D)
    assert not bool(jnp.any(jnp.isnan(out)))
    # bf16 MXU operands + approx reciprocals => bf16-level tolerance vs f32 ref.
    assert jnp.allclose(out, ref, rtol=5e-2, atol=5e-2), "mismatch vs f32 JAX reference"

    print("KERNEL_OK")
</pallas_src>

<mosaic_0001>
module attributes {stable_mosaic.version = 11 : i64} {
  func.func @encoder_layer_kernel(%arg0: i32, %arg1: memref<1x8x32xf32, #tpu.memory_space<vmem>>, %arg2: memref<1x1x8xf32, #tpu.memory_space<vmem>>, %arg3: memref<1x32xf32, #tpu.memory_space<vmem>>, %arg4: memref<1x32xf32, #tpu.memory_space<vmem>>, %arg5: memref<4x32x24xbf16, #tpu.memory_space<vmem>>, %arg6: memref<4x1x24xf32, #tpu.memory_space<vmem>>, %arg7: memref<4x8x32xbf16, #tpu.memory_space<vmem>>, %arg8: memref<1x32xf32, #tpu.memory_space<vmem>>, %arg9: memref<1x32xf32, #tpu.memory_space<vmem>>, %arg10: memref<1x32xf32, #tpu.memory_space<vmem>>, %arg11: memref<32x128xbf16, #tpu.memory_space<vmem>>, %arg12: memref<1x128xf32, #tpu.memory_space<vmem>>, %arg13: memref<128x32xbf16, #tpu.memory_space<vmem>>, %arg14: memref<1x32xf32, #tpu.memory_space<vmem>>, %arg15: memref<1x8x32xf32, #tpu.memory_space<vmem>>) attributes {dimension_semantics = [#tpu.dimension_semantics<parallel>], iteration_bounds = array<i64: 2>, scalar_prefetch = 0 : i64, scratch_operands = 0 : i64, tpu.core_type = #tpu.core_type<tc>, window_params = [{transform_indices = @transform_0, window_bounds = array<i64: 1, 8, 32>}, {transform_indices = @transform_1, window_bounds = array<i64: 1, 1, 8>}, {pipeline_mode = #tpu.pipeline_mode<synchronous>, transform_indices = @transform_2, window_bounds = array<i64: 1, 32>}, {pipeline_mode = #tpu.pipeline_mode<synchronous>, transform_indices = @transform_3, window_bounds = array<i64: 1, 32>}, {pipeline_mode = #tpu.pipeline_mode<synchronous>, transform_indices = @transform_4, window_bounds = array<i64: 4, 32, 24>}, {pipeline_mode = #tpu.pipeline_mode<synchronous>, transform_indices = @transform_5, window_bounds = array<i64: 4, 1, 24>}, {pipeline_mode = #tpu.pipeline_mode<synchronous>, transform_indices = @transform_6, window_bounds = array<i64: 4, 8, 32>}, {pipeline_mode = #tpu.pipeline_mode<synchronous>, transform_indices = @transform_7, window_bounds = array<i64: 1, 32>}, {pipeline_mode = #tpu.pipeline_mode<synchronous>, transform_indices = @transform_8, window_bounds = array<i64: 1, 32>}, {pipeline_mode = #tpu.pipeline_mode<synchronous>, transform_indices = @transform_9, window_bounds = array<i64: 1, 32>}, {pipeline_mode = #tpu.pipeline_mode<synchronous>, transform_indices = @transform_10, window_bounds = array<i64: 32, 128>}, {pipeline_mode = #tpu.pipeline_mode<synchronous>, transform_indices = @transform_11, window_bounds = array<i64: 1, 128>}, {pipeline_mode = #tpu.pipeline_mode<synchronous>, transform_indices = @transform_12, window_bounds = array<i64: 128, 32>}, {pipeline_mode = #tpu.pipeline_mode<synchronous>, transform_indices = @transform_13, window_bounds = array<i64: 1, 32>}, {transform_indices = @transform_14, window_bounds = array<i64: 1, 8, 32>}]} {
    %c0 = arith.constant 0 : index
    %c0_0 = arith.constant 0 : index
    %c0_1 = arith.constant 0 : index
    %0 = vector.load %arg1[%c0, %c0_0, %c0_1] : memref<1x8x32xf32, #tpu.memory_space<vmem>>, vector<1x8x32xf32>
    %1 = vector.shape_cast %0 : vector<1x8x32xf32> to vector<8x32xf32>
    %c0_2 = arith.constant 0 : index
    %c0_3 = arith.constant 0 : index
    %c0_4 = arith.constant 0 : index
    %2 = vector.load %arg2[%c0_2, %c0_3, %c0_4] : memref<1x1x8xf32, #tpu.memory_space<vmem>>, vector<1x1x8xf32>
    %3 = vector.shape_cast %2 : vector<1x1x8xf32> to vector<1x8xf32>
    %c0_5 = arith.constant 0 : index
    %c0_6 = arith.constant 0 : index
    %4 = vector.load %arg3[%c0_5, %c0_6] : memref<1x32xf32, #tpu.memory_space<vmem>>, vector<1x32xf32>
    %c0_7 = arith.constant 0 : index
    %c0_8 = arith.constant 0 : index
    %5 = vector.load %arg4[%c0_7, %c0_8] : memref<1x32xf32, #tpu.memory_space<vmem>>, vector<1x32xf32>
    %cst = arith.constant dense<0.000000e+00> : vector<8xf32>
    %6 = vector.multi_reduction <add>, %1, %cst [1] : vector<8x32xf32> to vector<8xf32>
    %7 = vector.shape_cast %6 : vector<8xf32> to vector<8x1xf32>
    %cst_9 = arith.constant 3.200000e+01 : f32
    %8 = vector.broadcast %cst_9 : f32 to vector<8x1xf32>
    %9 = arith.divf %7, %8 : vector<8x1xf32>
    %10 = vector.broadcast %9 : vector<8x1xf32> to vector<8x32xf32>
    %11 = arith.subf %1, %10 : vector<8x32xf32>
    %12 = arith.mulf %11, %11 : vector<8x32xf32>
    %cst_10 = arith.constant dense<0.000000e+00> : vector<8xf32>
    %13 = vector.multi_reduction <add>, %12, %cst_10 [1] : vector<8x32xf32> to vector<8xf32>
    %14 = vector.shape_cast %13 : vector<8xf32> to vector<8x1xf32>
    %cst_11 = arith.constant 0.0322580636 : f32
    %15 = vector.broadcast %cst_11 : f32 to vector<8x1xf32>
    %16 = arith.mulf %14, %15 : vector<8x1xf32>
    %17 = math.sqrt %16 : vector<8x1xf32>
    %cst_12 = arith.constant 9.99999997E-7 : f32
    %18 = vector.broadcast %cst_12 : f32 to vector<8x1xf32>
    %19 = arith.addf %17, %18 : vector<8x1xf32>
    %20 = tpu.reciprocal %19 {approx = true} : vector<8x1xf32> -> vector<8x1xf32>
    %21 = vector.broadcast %4 : vector<1x32xf32> to vector<8x32xf32>
    %22 = arith.mulf %21, %11 : vector<8x32xf32>
    %23 = vector.broadcast %20 : vector<8x1xf32> to vector<8x32xf32>
    %24 = arith.mulf %22, %23 : vector<8x32xf32>
    %25 = vector.broadcast %5 : vector<1x32xf32> to vector<8x32xf32>
    %26 = arith.addf %24, %25 : vector<8x32xf32>
    %27 = arith.truncf %26 : vector<8x32xf32> to vector<8x32xbf16>
    %28 = vector.shape_cast %27 : vector<8x32xbf16> to vector<1x8x32xbf16>
    %29 = vector.broadcast %28 : vector<1x8x32xbf16> to vector<4x8x32xbf16>
    %c0_13 = arith.constant 0 : index
    %c0_14 = arith.constant 0 : index
    %c0_15 = arith.constant 0 : index
    %30 = vector.load %arg5[%c0_13, %c0_14, %c0_15] : memref<4x32x24xbf16, #tpu.memory_space<vmem>>, vector<4x32x24xbf16>
    "tpu.trace_start"() <{level = 10 : i32, message = "hsd,hde->hse"}> : () -> ()
    %cst_16 = arith.constant dense<0.000000e+00> : vector<4x8x24xf32>
    %31 = tpu.matmul %29, %30, %cst_16 {dimension_numbers = #tpu.dot_dimension_numbers<[2], [1], [1], [2], [0, 0, 0, 1, 1, 2], [0], [0]>} : vector<4x8x32xbf16>, vector<4x32x24xbf16>, vector<4x8x24xf32> -> vector<4x8x24xf32>
    "tpu.trace_stop"() : () -> ()
    %c0_17 = arith.constant 0 : index
    %c0_18 = arith.constant 0 : index
    %c0_19 = arith.constant 0 : index
    %32 = vector.load %arg6[%c0_17, %c0_18, %c0_19] : memref<4x1x24xf32, #tpu.memory_space<vmem>>, vector<4x1x24xf32>
    %33 = vector.broadcast %32 : vector<4x1x24xf32> to vector<4x8x24xf32>
    %34 = arith.addf %31, %33 : vector<4x8x24xf32>
    %35 = vector.extract_strided_slice %34 {offsets = [0, 0, 0], sizes = [4, 8, 8], strides = [1, 1, 1]} : vector<4x8x24xf32> to vector<4x8x8xf32>
    %36 = vector.extract_strided_slice %34 {offsets = [0, 0, 8], sizes = [4, 8, 8], strides = [1, 1, 1]} : vector<4x8x24xf32> to vector<4x8x8xf32>
    %37 = vector.extract_strided_slice %34 {offsets = [0, 0, 16], sizes = [4, 8, 8], strides = [1, 1, 1]} : vector<4x8x24xf32> to vector<4x8x8xf32>
    %cst_20 = arith.constant 0.000000e+00 : f32
    %38 = vector.broadcast %cst_20 : f32 to vector<1x8xf32>
    %39 = arith.cmpf oeq, %3, %38 : vector<1x8xf32>
    %cst_21 = arith.constant -1.000000e+09 : f32
    %cst_22 = arith.constant 0.000000e+00 : f32
    %40 = vector.broadcast %cst_21 : f32 to vector<1x8xf32>
    %41 = vector.broadcast %cst_22 : f32 to vector<1x8xf32>
    %42 = arith.select %39, %40, %41 : vector<1x8xi1>, vector<1x8xf32>
    %43 = arith.truncf %35 : vector<4x8x8xf32> to vector<4x8x8xbf16>
    %44 = arith.truncf %36 : vector<4x8x8xf32> to vector<4x8x8xbf16>
    "tpu.trace_start"() <{level = 10 : i32, message = "hqd,hkd->hqk"}> : () -> ()
    %cst_23 = arith.constant dense<0.000000e+00> : vector<4x8x8xf32>
    %45 = tpu.matmul %43, %44, %cst_23 {dimension_numbers = #tpu.dot_dimension_numbers<[2], [2], [1], [1], [0, 0, 0, 1, 1, 1], [0], [0]>} : vector<4x8x8xbf16>, vector<4x8x8xbf16>, vector<4x8x8xf32> -> vector<4x8x8xf32>
    "tpu.trace_stop"() : () -> ()
    %cst_24 = arith.constant 0.353553385 : f32
    %46 = vector.broadcast %cst_24 : f32 to vector<4x8x8xf32>
    %47 = arith.mulf %45, %46 : vector<4x8x8xf32>
    %48 = vector.shape_cast %42 : vector<1x8xf32> to vector<1x1x8xf32>
    %49 = vector.broadcast %48 : vector<1x1x8xf32> to vector<4x8x8xf32>
    %50 = arith.addf %47, %49 : vector<4x8x8xf32>
    %cst_25 = arith.constant dense<0xFF800000> : vector<4x8xf32>
    %51 = vector.multi_reduction <maximumf>, %50, %cst_25 [2] : vector<4x8x8xf32> to vector<4x8xf32>
    %52 = vector.shape_cast %51 : vector<4x8xf32> to vector<4x8x1xf32>
    %53 = vector.broadcast %52 : vector<4x8x1xf32> to vector<4x8x8xf32>
    %54 = arith.subf %50, %53 : vector<4x8x8xf32>
    %55 = math.exp %54 : vector<4x8x8xf32>
    %cst_26 = arith.constant dense<0.000000e+00> : vector<4x8xf32>
    %56 = vector.multi_reduction <add>, %55, %cst_26 [2] : vector<4x8x8xf32> to vector<4x8xf32>
    %57 = vector.shape_cast %56 : vector<4x8xf32> to vector<4x8x1xf32>
    %58 = tpu.reciprocal %57 {approx = true} : vector<4x8x1xf32> -> vector<4x8x1xf32>
    %59 = vector.broadcast %58 : vector<4x8x1xf32> to vector<4x8x8xf32>
    %60 = arith.mulf %55, %59 : vector<4x8x8xf32>
    %61 = arith.truncf %60 : vector<4x8x8xf32> to vector<4x8x8xbf16>
    %62 = arith.truncf %37 : vector<4x8x8xf32> to vector<4x8x8xbf16>
    "tpu.trace_start"() <{level = 10 : i32, message = "hqk,hkd->hqd"}> : () -> ()
    %cst_27 = arith.constant dense<0.000000e+00> : vector<4x8x8xf32>
    %63 = tpu.matmul %61, %62, %cst_27 {dimension_numbers = #tpu.dot_dimension_numbers<[2], [1], [1], [2], [0, 0, 0, 1, 1, 2], [0], [0]>} : vector<4x8x8xbf16>, vector<4x8x8xbf16>, vector<4x8x8xf32> -> vector<4x8x8xf32>
    "tpu.trace_stop"() : () -> ()
    %64 = arith.truncf %63 : vector<4x8x8xf32> to vector<4x8x8xbf16>
    %c0_28 = arith.constant 0 : index
    %c0_29 = arith.constant 0 : index
    %c0_30 = arith.constant 0 : index
    %65 = vector.load %arg7[%c0_28, %c0_29, %c0_30] : memref<4x8x32xbf16, #tpu.memory_space<vmem>>, vector<4x8x32xbf16>
    "tpu.trace_start"() <{level = 10 : i32, message = "hqd,hdo->hqo"}> : () -> ()
    %cst_31 = arith.constant dense<0.000000e+00> : vector<4x8x32xf32>
    %66 = tpu.matmul %64, %65, %cst_31 {dimension_numbers = #tpu.dot_dimension_numbers<[2], [1], [1], [2], [0, 0, 0, 1, 1, 2], [0], [0]>} : vector<4x8x8xbf16>, vector<4x8x32xbf16>, vector<4x8x32xf32> -> vector<4x8x32xf32>
    "tpu.trace_stop"() : () -> ()
    %cst_32 = arith.constant dense<0.000000e+00> : vector<8x32xf32>
    %67 = vector.multi_reduction <add>, %66, %cst_32 [0] : vector<4x8x32xf32> to vector<8x32xf32>
    %c0_33 = arith.constant 0 : index
    %c0_34 = arith.constant 0 : index
    %68 = vector.load %arg8[%c0_33, %c0_34] : memref<1x32xf32, #tpu.memory_space<vmem>>, vector<1x32xf32>
    %69 = vector.broadcast %68 : vector<1x32xf32> to vector<8x32xf32>
    %70 = arith.addf %67, %69 : vector<8x32xf32>
    %71 = arith.addf %1, %70 : vector<8x32xf32>
    %c0_35 = arith.constant 0 : index
    %c0_36 = arith.constant 0 : index
    %72 = vector.load %arg9[%c0_35, %c0_36] : memref<1x32xf32, #tpu.memory_space<vmem>>, vector<1x32xf32>
    %c0_37 = arith.constant 0 : index
    %c0_38 = arith.constant 0 : index
    %73 = vector.load %arg10[%c0_37, %c0_38] : memref<1x32xf32, #tpu.memory_space<vmem>>, vector<1x32xf32>
    %cst_39 = arith.constant dense<0.000000e+00> : vector<8xf32>
    %74 = vector.multi_reduction <add>, %71, %cst_39 [1] : vector<8x32xf32> to vector<8xf32>
    %75 = vector.shape_cast %74 : vector<8xf32> to vector<8x1xf32>
    %cst_40 = arith.constant 3.200000e+01 : f32
    %76 = vector.broadcast %cst_40 : f32 to vector<8x1xf32>
    %77 = arith.divf %75, %76 : vector<8x1xf32>
    %78 = vector.broadcast %77 : vector<8x1xf32> to vector<8x32xf32>
    %79 = arith.subf %71, %78 : vector<8x32xf32>
    %80 = arith.mulf %79, %79 : vector<8x32xf32>
    %cst_41 = arith.constant dense<0.000000e+00> : vector<8xf32>
    %81 = vector.multi_reduction <add>, %80, %cst_41 [1] : vector<8x32xf32> to vector<8xf32>
    %82 = vector.shape_cast %81 : vector<8xf32> to vector<8x1xf32>
    %cst_42 = arith.constant 0.0322580636 : f32
    %83 = vector.broadcast %cst_42 : f32 to vector<8x1xf32>
    %84 = arith.mulf %82, %83 : vector<8x1xf32>
    %85 = math.sqrt %84 : vector<8x1xf32>
    %cst_43 = arith.constant 9.99999997E-7 : f32
    %86 = vector.broadcast %cst_43 : f32 to vector<8x1xf32>
    %87 = arith.addf %85, %86 : vector<8x1xf32>
    %88 = tpu.reciprocal %87 {approx = true} : vector<8x1xf32> -> vector<8x1xf32>
    %89 = vector.broadcast %72 : vector<1x32xf32> to vector<8x32xf32>
    %90 = arith.mulf %89, %79 : vector<8x32xf32>
    %91 = vector.broadcast %88 : vector<8x1xf32> to vector<8x32xf32>
    %92 = arith.mulf %90, %91 : vector<8x32xf32>
    %93 = vector.broadcast %73 : vector<1x32xf32> to vector<8x32xf32>
    %94 = arith.addf %92, %93 : vector<8x32xf32>
    %95 = arith.truncf %94 : vector<8x32xf32> to vector<8x32xbf16>
    %c0_44 = arith.constant 0 : index
    %c0_45 = arith.constant 0 : index
    %96 = vector.load %arg11[%c0_44, %c0_45] : memref<32x128xbf16, #tpu.memory_space<vmem>>, vector<32x128xbf16>
    %cst_46 = arith.constant dense<0.000000e+00> : vector<8x128xf32>
    %97 = tpu.matmul %95, %96, %cst_46 {dimension_numbers = #tpu.dot_dimension_numbers<[1], [0], [0], [1], [0, 0, 1, 1], [], []>} : vector<8x32xbf16>, vector<32x128xbf16>, vector<8x128xf32> -> vector<8x128xf32>
    %c0_47 = arith.constant 0 : index
    %c0_48 = arith.constant 0 : index
    %98 = vector.load %arg12[%c0_47, %c0_48] : memref<1x128xf32, #tpu.memory_space<vmem>>, vector<1x128xf32>
    %99 = vector.broadcast %98 : vector<1x128xf32> to vector<8x128xf32>
    %100 = arith.addf %97, %99 : vector<8x128xf32>
    %cst_49 = arith.constant 0.000000e+00 : f32
    %101 = vector.broadcast %cst_49 : f32 to vector<8x128xf32>
    %102 = arith.maximumf %100, %101 : vector<8x128xf32>
    %103 = arith.truncf %102 : vector<8x128xf32> to vector<8x128xbf16>
    %c0_50 = arith.constant 0 : index
    %c0_51 = arith.constant 0 : index
    %104 = vector.load %arg13[%c0_50, %c0_51] : memref<128x32xbf16, #tpu.memory_space<vmem>>, vector<128x32xbf16>
    %cst_52 = arith.constant dense<0.000000e+00> : vector<8x32xf32>
    %105 = tpu.matmul %103, %104, %cst_52 {dimension_numbers = #tpu.dot_dimension_numbers<[1], [0], [0], [1], [0, 0, 1, 1], [], []>} : vector<8x128xbf16>, vector<128x32xbf16>, vector<8x32xf32> -> vector<8x32xf32>
    %c0_53 = arith.constant 0 : index
    %c0_54 = arith.constant 0 : index
    %106 = vector.load %arg14[%c0_53, %c0_54] : memref<1x32xf32, #tpu.memory_space<vmem>>, vector<1x32xf32>
    %107 = vector.broadcast %106 : vector<1x32xf32> to vector<8x32xf32>
    %108 = arith.addf %105, %107 : vector<8x32xf32>
    %109 = arith.addf %71, %108 : vector<8x32xf32>
    %c0_55 = arith.constant 0 : index
    %c0_56 = arith.constant 0 : index
    %c0_57 = arith.constant 0 : index
    %110 = vector.load %arg15[%c0_55, %c0_56, %c0_57] : memref<1x8x32xf32, #tpu.memory_space<vmem>>, vector<1x8x32xf32>
    %111 = vector.shape_cast %110 : vector<1x8x32xf32> to vector<8x32xf32>
    %112 = vector.shape_cast %109 : vector<8x32xf32> to vector<1x8x32xf32>
    tpu.vector_store %arg15[%c0_55, %c0_56, %c0_57], %112 {strides = array<i32>} : memref<1x8x32xf32, #tpu.memory_space<vmem>>, vector<1x8x32xf32>,
    return
  }
  func.func @transform_0(%arg0: i32) -> (i32, i32, i32) {
    %c0_i32 = arith.constant 0 : i32
    %c0_i32_0 = arith.constant 0 : i32
    %c0_i32_1 = arith.constant 0 : i32
    return %arg0, %c0_i32, %c0_i32_0 : i32, i32, i32
  }
  func.func @transform_1(%arg0: i32) -> (i32, i32, i32) {
    %c0_i32 = arith.constant 0 : i32
    %c0_i32_0 = arith.constant 0 : i32
    %c0_i32_1 = arith.constant 0 : i32
    return %arg0, %c0_i32, %c0_i32_0 : i32, i32, i32
  }
  func.func @transform_2(%arg0: i32) -> (i32, i32) {
    %c0_i32 = arith.constant 0 : i32
    %c0_i32_0 = arith.constant 0 : i32
    %c0_i32_1 = arith.constant 0 : i32
    return %c0_i32, %c0_i32_0 : i32, i32
  }
  func.func @transform_3(%arg0: i32) -> (i32, i32) {
    %c0_i32 = arith.constant 0 : i32
    %c0_i32_0 = arith.constant 0 : i32
    %c0_i32_1 = arith.constant 0 : i32
    return %c0_i32, %c0_i32_0 : i32, i32
  }
  func.func @transform_4(%arg0: i32) -> (i32, i32, i32) {
    %c0_i32 = arith.constant 0 : i32
    %c0_i32_0 = arith.constant 0 : i32
    %c0_i32_1 = arith.constant 0 : i32
    %c0_i32_2 = arith.constant 0 : i32
    return %c0_i32, %c0_i32_0, %c0_i32_1 : i32, i32, i32
  }
  func.func @transform_5(%arg0: i32) -> (i32, i32, i32) {
    %c0_i32 = arith.constant 0 : i32
    %c0_i32_0 = arith.constant 0 : i32
    %c0_i32_1 = arith.constant 0 : i32
    %c0_i32_2 = arith.constant 0 : i32
    return %c0_i32, %c0_i32_0, %c0_i32_1 : i32, i32, i32
  }
  func.func @transform_6(%arg0: i32) -> (i32, i32, i32) {
    %c0_i32 = arith.constant 0 : i32
    %c0_i32_0 = arith.constant 0 : i32
    %c0_i32_1 = arith.constant 0 : i32
    %c0_i32_2 = arith.constant 0 : i32
    return %c0_i32, %c0_i32_0, %c0_i32_1 : i32, i32, i32
  }
  func.func @transform_7(%arg0: i32) -> (i32, i32) {
    %c0_i32 = arith.constant 0 : i32
    %c0_i32_0 = arith.constant 0 : i32
    %c0_i32_1 = arith.constant 0 : i32
    return %c0_i32, %c0_i32_0 : i32, i32
  }
  func.func @transform_8(%arg0: i32) -> (i32, i32) {
    %c0_i32 = arith.constant 0 : i32
    %c0_i32_0 = arith.constant 0 : i32
    %c0_i32_1 = arith.constant 0 : i32
    return %c0_i32, %c0_i32_0 : i32, i32
  }
  func.func @transform_9(%arg0: i32) -> (i32, i32) {
    %c0_i32 = arith.constant 0 : i32
    %c0_i32_0 = arith.constant 0 : i32
    %c0_i32_1 = arith.constant 0 : i32
    return %c0_i32, %c0_i32_0 : i32, i32
  }
  func.func @transform_10(%arg0: i32) -> (i32, i32) {
    %c0_i32 = arith.constant 0 : i32
    %c0_i32_0 = arith.constant 0 : i32
    %c0_i32_1 = arith.constant 0 : i32
    return %c0_i32, %c0_i32_0 : i32, i32
  }
  func.func @transform_11(%arg0: i32) -> (i32, i32) {
    %c0_i32 = arith.constant 0 : i32
    %c0_i32_0 = arith.constant 0 : i32
    %c0_i32_1 = arith.constant 0 : i32
    return %c0_i32, %c0_i32_0 : i32, i32
  }
  func.func @transform_12(%arg0: i32) -> (i32, i32) {
    %c0_i32 = arith.constant 0 : i32
    %c0_i32_0 = arith.constant 0 : i32
    %c0_i32_1 = arith.constant 0 : i32
    return %c0_i32, %c0_i32_0 : i32, i32
  }
  func.func @transform_13(%arg0: i32) -> (i32, i32) {
    %c0_i32 = arith.constant 0 : i32
    %c0_i32_0 = arith.constant 0 : i32
    %c0_i32_1 = arith.constant 0 : i32
    return %c0_i32, %c0_i32_0 : i32, i32
  }
  func.func @transform_14(%arg0: i32) -> (i32, i32, i32) {
    %c0_i32 = arith.constant 0 : i32
    %c0_i32_0 = arith.constant 0 : i32
    %c0_i32_1 = arith.constant 0 : i32
    return %arg0, %c0_i32, %c0_i32_0 : i32, i32, i32
  }
}

</mosaic_0001>

<bundles_post_ra>
// kernel: tpu_custom_call.1
= control target key start
LH: loop header
LB: loop body
LE: loop exit
PB: predicated region body
PF: predicated region fallthrough
CT: control target
= control target key end

     0   :  { %s2555_s0 = inlined_call_operand.vmem [shape: f32[2,8,32], index: 0, kind: input, shape index: {}]   ;;  %s2556_s1 = inlined_call_operand.vmem [shape: f32[2,1,8], index: 1, kind: input, shape index: {}]   ;;  %s2557_s2 = inlined_call_operand.vmem [shape: f32[1,32], index: 2, kind: input, shape index: {}]   ;;  %s2558_s3 = inlined_call_operand.vmem [shape: f32[1,32], index: 3, kind: input, shape index: {}]   ;;  %s2559_s4 = inlined_call_operand.vmem [shape: bf16[4,32,24], index: 4, kind: input, shape index: {}]   ;;  %s2560_s5 = inlined_call_operand.vmem [shape: f32[4,1,24], index: 5, kind: input, shape index: {}]   ;;  %s2561_s6 = inlined_call_operand.vmem [shape: bf16[4,8,32], index: 6, kind: input, shape index: {}]   ;;  %s2562_s7 = inlined_call_operand.vmem [shape: f32[1,32], index: 7, kind: input, shape index: {}]   ;;  %s2563_s8 = inlined_call_operand.vmem [shape: f32[1,32], index: 8, kind: input, shape index: {}]   ;;  %s2564_s9 = inlined_call_operand.vmem [shape: f32[1,32], index: 9, kind: input, shape index: {}]   ;;  %s2565_s10 = inlined_call_operand.vmem [shape: bf16[32,128], index: 10, kind: input, shape index: {}]   ;;  %s2566_s11 = inlined_call_operand.vmem [shape: f32[1,128], index: 11, kind: input, shape index: {}]   ;;  %s2567_s12 = inlined_call_operand.vmem [shape: bf16[128,32], index: 12, kind: input, shape index: {}]   ;;  %s2568_s13 = inlined_call_operand.vmem [shape: f32[1,32], index: 13, kind: input, shape index: {}]   ;;  %s2569_s14 = inlined_call_operand.hbm [shape: f32[2,8,32], index: 14, kind: output, shape index: {}]  }
   0x1   :  { %2570 = sst [smem:[#allocation5_spill]] %s2555_s0 }
   0x2   :  { %2571 = sst [smem:[#allocation6_spill]] %s2556_s1 }
   0x3   :  { %2572 = sst [smem:[#allocation7_spill]] %s2557_s2 }
   0x4   :  { %2573 = sst [smem:[#allocation8_spill]] %s2558_s3 }
   0x5   :  { %19 = vsyncpa [#allocation3], 0 }
   0x6   :  { %21 = vsyncpa [#allocation3 + $0x1], 0  ;;  %s2203_s29 = smov 0   ;;  %s2205_s30 = smov 0  }
   0x7   :  { %s2207_s15 = smov 0   ;;  %s2209_s16 = smov 0  }
   0x8 LB: > { %s2224_s17 = sadd.s32 4294967295, %s2121_s16   ;;  %s1740_s18 = sadd.s32 4294967294, %s2121_s16   ;;  %s2121_s16 = sphi %s2209_s16, %s2583_s16   ;;  %s2117_s15 = sphi %s2207_s15, %s2582_s15   ;;  %s2113_s30 = sphi %s2205_s30, %s2581_s30   ;;  %s2109_s29 = sphi %s2203_s29, %s2580_s29  }
   0x9   : > { %s2228_s19 = sadd.s32 1, %s2121_s16   ;;  %s338_s20 = sadd.s32 1, %s2117_s15 }
   0xa   : > { %s335_s21 = ssub.s32 %s2121_s16, %s2228_s19  ;;  %p348_p0 = scmp.ne.s32.totalorder %s2117_s15, %s2113_s30 }
   0xb   : > { %p336_p1 = scmp.eq.s32.totalorder %s335_s21, 0  ;;  %p349_p2 = scmp.eq.s32.totalorder %s2224_s17, 1 }
   0xc   : > { %p354_p3 = scmp.ne.s32.totalorder %s2113_s30, %s2109_s29  ;;  %p355_p4 = scmp.eq.s32.totalorder %s1740_s18, 1 }
   0xd   : > { %s2239_s22 = scalar_select %p336_p1, %s2117_s15, %s338_s20  }
   0xe   : > { %p2241_p5 = por %p349_p2, %p348_p0  ;;  %p2245_p6 = por %p355_p4, %p354_p3 }
   0xf   : > { %p1743_p7 = scmp.ge.s32.totalorder %s2121_s16, 1  ;;  %p422_p8 = scmp.lt.s32.totalorder %s2121_s16, 3 }
  0x11   : > { %p423_p9 = pnand %p1743_p7, %p422_p8 }
  0x12   : > { %p470_p10 = scmp.lt.s32.totalorder (!%p423_p9), %s2224_s17, 1  ;;  %s2576_s0 = sld [smem:[#allocation5_spill]] (!%p423_p9) }
  0x13   : > { %426 = sbr.rel (%p423_p9) target bundleno = 2337 (0x921), region = 76  ;;  %s2577_s2 = sld [smem:[#allocation7_spill]] (!%p423_p9) }
  0x14   : > { %s2578_s3 = sld [smem:[#allocation8_spill]] (!%p423_p9) }
  0x15   : > { %s2579_s1 = sld [smem:[#allocation6_spill]] (!%p423_p9) }
  0x18   : > { %v2123_v0 = vmov 0.0   ;;  %s2255_s25 = scalar_select %p470_p10, %s2224_s17, 1  ;;  %vm482_vm0 = vcmask 261120   ;;  %v2019_v8 = vld [vmem:[%s2559_s4 + $0x8] sm:$0xff]   ;;  %v2020_v9 = vld [vmem:[%s2559_s4 + $0x38] sm:$0xff]   ;;  %vm2124_vm1 = vmmov 0  }
  0x19   : > { %1844 = vmatprep.subr.bf16.mxu0 %v2123_v0  ;;  %1868 = vmatprep.subr.bf16.mxu1 %v2123_v0  ;;  %v2021_v10 = vld [vmem:[%s2559_s4] sm:$0xff]   ;;  %v2022_v11 = vld [vmem:[%s2559_s4 + $0x30] sm:$0xff]   ;;  %v2023_v26 = vld [vmem:[%s2559_s4 + $0x18] sm:$0xff]   ;;  %vm783_vm4 = vcmask 64512   ;;  %vm1044_vm6 = vcmask 1043456  }
  0x1a   : > { %s1745_s26 = sshll.u32 %s2255_s25, 3  ;;  %1848 = vmatprep.mubr.msk.bf16.mxu0 %vm2124_vm1, %v2123_v0  ;;  %1872 = vmatprep.mubr.msk.bf16.mxu1 %vm2124_vm1, %v2123_v0  ;;  %v1746_v20 = vld [vmem:[%s2577_s2] ss:$0 sm:$0xff]  ;;  %v2024_v28 = vld [vmem:[%s2559_s4 + $0x10] sm:$0xff]   ;;  %v2025_v29 = vld [vmem:[%s2559_s4 + $0x28] sm:$0xff]  }
  0x1b   : > { %s473_s18 = scalar_lea.vmem %s2576_s0, %s1745_s26  ;;  %1845 = vmatpush3.bf16.msra.mxu0 %v2019_v8  ;;  %1869 = vmatpush3.bf16.msra.mxu1 %v2020_v9  ;;  %v1747_v23 = vld [vmem:[%s2578_s3] ss:$0 sm:$0xff]  ;;  %s2125_s0 = smov 120   ;;  %v1749_v42 = vld [vmem:[%s2560_s5 + $0x1] ss:$0 sm:$0xff] }
  0x1c   : > { %v2261_v1 = vld [vmem:[%s473_s18] sm:$0xff]  ;;  %1846 = vmatprep.subr.bf16.mxu0 %v2123_v0  ;;  %1870 = vmatprep.subr.bf16.mxu1 %v2123_v0  ;;  %s476_s27 = scalar_lea.vmem %s2579_s1, %s2255_s25  ;;  %s2126_s25 = smov 112  }
  0x1d   : > { %v483_v2 = vsel %vm482_vm0, %v2261_v1, 0.0  ;;  %v2026_v30 = vld [vmem:[%s2559_s4 + $0x20] sm:$0xff]   ;;  %s1793_s26 = sshll.u32 %s2224_s17, 7 }
  0x1e   : > { %484 = vadd.xlane.f32.xlu0 %v483_v2  ;;  %v1748_v31 = vld [vmem:[%s2560_s5] ss:$0 sm:$0xff]  ;;  %v1751_v43 = vld [vmem:[%s2560_s5 + $0x3] ss:$0 sm:$0xff]  ;;  %v1750_v51 = vld [vmem:[%s2560_s5 + $0x2] ss:$0 sm:$0xff]  ;;  %s2513_s2 = scalar_lea.hbm %s2569_s14, %s1793_s26 }
  0x1f   : > { %1847 = vmatpush3.bf16.msra.mxu0 %v2021_v10  ;;  %1871 = vmatpush3.bf16.msra.mxu1 %v2022_v11 }
  0x20   : > { %1852 = vmatprep.subr.bf16.mxu0 %v2123_v0  ;;  %1882 = vmatprep.subr.bf16.mxu1 %v2123_v0 }
  0xa7   : > { %v485_v3 = vpop.xlane.xlu0 %484 }
  0xa8   : > { %v487_v4 = vmul.f32 0.03125, %v485_v3 }
  0xaa   : > { %v488_v5 = vsub.f32 %v2261_v1, %v487_v4 }
  0xac   : > { %v489_v6 = vmul.f32 %v488_v5, %v488_v5  ;;  %v509_v21 = vmul.f32 %v1746_v20, %v488_v5  ;;  %v982_v5 = vlaneseq }
  0xae   : > { %v490_v7 = vsel %vm482_vm0, %v489_v6, 0.0  ;;  %v479_v6 = vld [vmem:[%s476_s27] sm:$0x1]  ;;  %s2127_s27 = smov [#allocation2]  }
  0xaf   : > { %491 = vadd.xlane.f32.xlu0 %v490_v7  ;;  %v983_v7 = vshrl.u32 %v982_v5, 7  ;;  %vm774_vm5 = vcmp.eq.f32.partialorder %v479_v6, 0.0 }
  0xb0   : > { %v775_v9 = vsel %vm774_vm5, -1e+09, %v2123_v0 }
  0xb1   : > { %v984_v8 = vsub.s32 0, %v983_v7 }
  0xb3   : > { %v985_v10 = vrot.slane %v775_v9, %v984_v8 }
 0x138   : > { %v492_v12 = vpop.xlane.xlu0 %491 }
 0x139   : > { %v493_v13 = vmul.f32 0.032258064, %v492_v12 }
 0x13b   : > { %2037 = vrsqrt.f32 %v493_v13  ;;  %vm496_vm2 = vcmp.eq.f32.partialorder %v493_v13, inf  ;;  %v499_v16 = vand.u32 2147483648, %v493_v13  ;;  %vm498_vm3 = vcmp.eq.f32.partialorder %v493_v13, 0.0 }
 0x148   : > { %v2038_v14 = vpop.eup %2037 }
 0x149   : > { %v495_v15 = vmul.f32 %v2038_v14, %v493_v13 }
 0x14b   : > { %v497_v17 = vsel %vm496_vm2, %v493_v13, %v495_v15 }
 0x14c   : > { %v500_v18 = vsel %vm498_vm3, %v499_v16, %v497_v17 }
 0x14d   : > { %v501_v19 = vadd.f32 1e-06, %v500_v18 }
 0x14f   : > { %2039 = vrcp.f32 %v501_v19 }
 0x15c   : > { %v2040_v22 = vpop.eup %2039 }
 0x15d   : > { %v510_v24 = vmul.f32 %v2040_v22, %v509_v21 }
 0x15f   : > { %v517_v25 = vadd.f32 %v1747_v23, %v510_v24 }
 0x161   : > { %v518_v27 = vpack.c.bf16 %v517_v25, %v517_v25 }
 0x163   : > { %1849 = vmatmul.mubr.msk.bf16.vlgmr.msra.gmra.mxu0 %vm482_vm0, %v518_v27  ;;  %1873 = vmatmul.mubr.msk.bf16.vlgmr.msra.gmra.mxu1 %vm482_vm0, %v518_v27 }
 0x164   : > { %1853 = vmatpush3.bf16.msra.mxu0 %v2023_v26  ;;  %1856 = vmatprep.mubr.msk.bf16.mxu0 %vm2124_vm1, %v2123_v0 }
 0x165   : > { %1854 = vmatprep.subr.bf16.mxu0 %v2123_v0  ;;  %1884 = vmatprep.mubr.msk.bf16.mxu1 %vm2124_vm1, %v2123_v0 }
 0x168   : > { %1855 = vmatpush3.bf16.msra.mxu0 %v2024_v28 }
 0x169   : > { %1860 = vmatprep.subr.bf16.mxu0 %v2123_v0 }
 0x16b   : > { %1857 = vmatmul.mubr.msk.bf16.vlgmr.msra.gmra.mxu0 %vm482_vm0, %v518_v27 }
 0x16c   : > { %1861 = vmatpush3.bf16.msra.mxu0 %v2025_v29  ;;  %1864 = vmatprep.mubr.msk.bf16.mxu0 %vm2124_vm1, %v2123_v0 }
 0x16d   : > { %1862 = vmatprep.subr.bf16.mxu0 %v2123_v0 }
 0x170   : > { %1863 = vmatpush3.bf16.msra.mxu0 %v2026_v30 }
 0x171   : > { %1876 = vmatprep.subr.bf16.mxu0 %v2123_v0 }
 0x173   : > { %1865 = vmatmul.mubr.msk.bf16.vlgmr.msra.gmra.mxu0 %vm482_vm0, %v518_v27 }
 0x174   : > { %1878 = vmatprep.mubr.msk.bf16.mxu0 %vm2124_vm1, %v2123_v0 }
 0x223   : > { %v612_v32 = vpop.f32.mrf.mxu0  ;;  %v768_v33 = vpop.f32.mrf.mxu1 }
 0x224   : > { %v613_v34 = vadd.f32 %v1748_v31, %v612_v32  ;;  %v769_v47 = vadd.f32 %v1751_v43, %v768_v33 }
 0x225   : > { %v1850_v35 = vpop.f32.mrf.mxu0  ;;  %v1874_v36 = vpop.f32.mrf.mxu1 }
 0x226   : > { %v2324_v37 = vpack.c.bf16 %v613_v34, %v613_v34  ;;  %v2339_v52 = vpack.c.bf16 %v769_v47, %v769_v47 }
 0x227   : > { %v615_v38 = vpop.f32.mrf.mxu0  ;;  %v771_v39 = vpop.f32.mrf.mxu1 }
 0x228   : > { %781 = vrot.lane.b32.xlu1 %v2324_v37, %s2125_s0 }
 0x229   : > { %v1851_v40 = vpop.f32.mrf.mxu0  ;;  %v1875_v41 = vpop.f32.mrf.mxu1 }
 0x22b   : > { %v664_v44 = vpop.f32.mrf.mxu0 }
 0x22c   : > { %v665_v45 = vadd.f32 %v1749_v42, %v664_v44 }
 0x22d   : > { %v1858_v46 = vpop.f32.mrf.mxu0 }
 0x22e   : > { %v2333_v48 = vpack.c.bf16 %v665_v45, %v665_v45 }
 0x22f   : > { %v667_v49 = vpop.f32.mrf.mxu0 }
 0x230   : > { %831 = vrot.lane.b32.xlu1 %v2333_v48, %s2125_s0 }
 0x231   : > { %v1859_v50 = vpop.f32.mrf.mxu0 }
 0x233   : > { %v716_v53 = vpop.f32.mrf.mxu0 }
 0x234   : > { %v717_v54 = vadd.f32 %v1750_v51, %v716_v53  ;;  %929 = vrot.lane.b32.xlu1 %v2339_v52, %s2125_s0 }
 0x235   : > { %v1866_v55 = vpop.f32.mrf.mxu0 }
 0x236   : > { %v2342_v56 = vpack.c.bf16 %v717_v54, %v717_v54 }
 0x237   : > { %v719_v57 = vpop.f32.mrf.mxu0 }
 0x238   : > { %880 = vrot.lane.b32.xlu0 %v2342_v56, %s2125_s0  ;;  %s467_s0 = sand.u32 1, %s2113_s30  }
 0x239   : > { %v1867_v58 = vpop.f32.mrf.mxu0  ;;  %s1744_s21 = sshll.u32 %s467_s0, 3  ;;  %s1659_s17 = scalar_lea.sflag [#allocation3], %s467_s0 }
 0x23a   : > { %s469_s28 = scalar_lea.vmem [#allocation2], %s1744_s21 }
 0x23b   : > { %s1672_s18 = sshll.u32 %s469_s28, 4  ;;  %s2515_s18 = int_to_ptr.vmem [resolvable:$true] %s1672_s18 }
 0x23c   : > { %s2061_s21 = scalar_lea.vmem %s2515_s18, 128 }
 0x23d   : > { %p2062_p11 = scmp.ne.s32.totalorder %s2515_s18, %s2061_s21 }
 0x23f   : > { %p2063_p12 = pnand %p2062_p11, %p2241_p5 }
 0x241   : > { %p2064_p13 = pneg %p2063_p12 }
 0x29a   : > { %v782_v59 = vpop.permute.xlu1 %781 }
 0x29b   : > { %v788_v60 = vsel %vm783_vm4, %v782_v59, 0 }
 0x29c   : > { %1877 = vmatpush3.bf16.xpose.msra.mxu0 %v788_v60 }
 0x29d   : > { %1888 = vmatprep.subr.bf16.mxu0 %v2123_v0 }
 0x2a2   : > { %v832_v61 = vpop.permute.xlu1 %831 }
 0x2a3   : > { %v837_v62 = vsel %vm783_vm4, %v832_v61, 0  ;;  %1879 = vmatmul.mubr.msk.bf16.vlgmr.msra.gmra.mxu0 %vm783_vm4, %v2324_v37 }
 0x2a4   : > { %1883 = vmatpush3.bf16.xpose.msra.mxu1 %v837_v62  ;;  %1890 = vmatprep.mubr.msk.bf16.mxu0 %vm2124_vm1, %v2123_v0 }
 0x2a5   : > { %1894 = vmatprep.subr.bf16.mxu1 %v2123_v0 }
 0x2a6   : > { %v930_v63 = vpop.permute.xlu1 %929 }
 0x2a7   : > { %v935_v3 = vsel %vm783_vm4, %v930_v63, 0 }
 0x2aa   : > { %v881_v2 = vpop.permute.xlu0 %880 }
 0x2ab   : > { %v886_v4 = vsel %vm783_vm4, %v881_v2, 0  ;;  %1885 = vmatmul.mubr.msk.bf16.vlgmr.msra.gmra.mxu1 %vm783_vm4, %v2333_v48 }
 0x2ac   : > { %1889 = vmatpush3.bf16.xpose.msra.mxu0 %v886_v4  ;;  %1895 = vmatpush3.bf16.xpose.msra.mxu1 %v935_v3 }
 0x2ad   : > { %1896 = vmatprep.mubr.msk.bf16.mxu1 %vm2124_vm1, %v2123_v0  ;;  %1900 = vmatprep.subr.bf16.mxu0 %v2123_v0 }
 0x2ae   : > { %1906 = vmatprep.subr.bf16.mxu1 %v2123_v0 }
 0x2b3   : > { %1891 = vmatmul.mubr.msk.bf16.vlgmr.msra.gmra.mxu0 %vm783_vm4, %v2342_v56  ;;  %1897 = vmatmul.mubr.msk.bf16.vlgmr.msra.gmra.mxu1 %vm783_vm4, %v2339_v52 }
 0x2b4   : > { %1902 = vmatprep.mubr.msk.bf16.mxu0 %vm2124_vm1, %v2123_v0  ;;  %1908 = vmatprep.mubr.msk.bf16.mxu1 %vm2124_vm1, %v2123_v0 }
 0x363   : > { %v824_v11 = vpop.f32.mrf.mxu0 }
 0x364   : > { %v977_v12 = vmul.f32 0.35355338, %v824_v11 }
 0x365   : > { %v1880_v13 = vpop.f32.mrf.mxu0 }
 0x366   : > { %v987_v14 = vadd.f32 %v985_v10, %v977_v12 }
 0x367   : > { %v827_v15 = vpop.f32.mrf.mxu0 }
 0x368   : > { %v991_v16 = vsel %vm783_vm4, %v987_v14, -inf }
 0x369   : > { %992 = vmax.xlane.f32.xlu1 %v991_v16  ;;  %v1881_v17 = vpop.f32.mrf.mxu0 }
 0x36b   : > { %v873_v18 = vpop.f32.mrf.mxu1 }
 0x36c   : > { %v978_v19 = vmul.f32 0.35355338, %v873_v18 }
 0x36d   : > { %v1886_v20 = vpop.f32.mrf.mxu1 }
 0x36e   : > { %v988_v21 = vadd.f32 %v985_v10, %v978_v19 }
 0x36f   : > { %v876_v22 = vpop.f32.mrf.mxu1 }
 0x370   : > { %v994_v23 = vsel %vm783_vm4, %v988_v21, -inf }
 0x371   : > { %v1887_v24 = vpop.f32.mrf.mxu1  ;;  %995 = vmax.xlane.f32.xlu0 %v994_v23  ;;  %v1237_v23 = vld [vmem:[%s2561_s6 + $0x4] sm:$0xf] }
 0x372   : > { %v1290_v24 = vsel %vm1044_vm6, %v1237_v23, 0  ;;  %v2032_v23 = vld [vmem:[%s2567_s12 + $0x20] sm:$0xff]  }
 0x373   : > { %v922_v25 = vpop.f32.mrf.mxu0  ;;  %v971_v26 = vpop.f32.mrf.mxu1 }
 0x374   : > { %v979_v27 = vmul.f32 0.35355338, %v922_v25  ;;  %v980_v28 = vmul.f32 0.35355338, %v971_v26  ;;  %v1238_v25 = vld [vmem:[%s2561_s6 + $0x8] sm:$0xf] }
 0x375   : > { %v1892_v29 = vpop.f32.mrf.mxu0  ;;  %v1898_v30 = vpop.f32.mrf.mxu1 }
 0x376   : > { %v989_v31 = vadd.f32 %v985_v10, %v979_v27  ;;  %v990_v35 = vadd.f32 %v985_v10, %v980_v28  ;;  %v1336_v28 = vsel %vm1044_vm6, %v1238_v25, 0  ;;  %v2034_v25 = vld [vmem:[%s2567_s12 + $0x10] sm:$0xff]  }
 0x377   : > { %v925_v32 = vpop.f32.mrf.mxu0  ;;  %v974_v33 = vpop.f32.mrf.mxu1 }
 0x378   : > { %v997_v34 = vsel %vm783_vm4, %v989_v31, -inf  ;;  %v1000_v39 = vsel %vm783_vm4, %v990_v35, -inf  ;;  %v1239_v32 = vld [vmem:[%s2561_s6 + $0xc] sm:$0xf] }
 0x379   : > { %v1899_v36 = vpop.f32.mrf.mxu1  ;;  %998 = vmax.xlane.f32.xlu1 %v997_v34  ;;  %v1893_v38 = vpop.f32.mrf.mxu0 }
 0x37d   : > { %1001 = vmax.xlane.f32.xlu1 %v1000_v39 }
 0x387   : > { %1039 = vrot.lane.b32.xlu0 %v2324_v37, %s2126_s25 }
 0x38e   : > { %1088 = vrot.lane.b32.xlu1 %v2333_v48, %s2126_s25 }
 0x3f2   : > { %v993_v40 = vpop.xlane.xlu1 %992 }
 0x3f3   : > { %v1003_v41 = vsub.f32 %v987_v14, %v993_v40 }
 0x3f5   : > { %v1007_v42 = vmul.f32 1.442695, %v1003_v41 }
 0x3f7   : > { %2041 = vpow2.f32 %v1007_v42 }
 0x3fa   : > { %v996_v43 = vpop.xlane.xlu0 %995 }
 0x3fb   : > { %v1004_v44 = vsub.f32 %v988_v21, %v996_v43  ;;  %v1236_v21 = vld [vmem:[%s2561_s6] sm:$0xf] }
 0x3fc   : > { %v1244_v22 = vsel %vm1044_vm6, %v1236_v21, 0  ;;  %v2030_v21 = vld [vmem:[%s2567_s12 + $0x30] sm:$0xff]  }
 0x3fd   : > { %v1009_v45 = vmul.f32 1.442695, %v1004_v44 }
 0x3fe   : > { %v1040_v46 = vpop.permute.xlu0 %1039 }
 0x3ff   : > { %2043 = vpow2.f32 %v1009_v45  ;;  %v1046_v47 = vsel %vm1044_vm6, %v1040_v46, 0 }
 0x400   : > { %1901 = vmatpush3.bf16.msra.mxu0 %v1046_v47 }
 0x401   : > { %1912 = vmatprep.subr.bf16.mxu0 %v2123_v0 }
 0x402   : > { %v999_v49 = vpop.xlane.xlu1 %998 }
 0x403   : > { %v1005_v37 = vsub.f32 %v989_v31, %v999_v49 }
 0x404   : > { %v2042_v50 = vpop.eup %2041 }
 0x405   : > { %v1011_v51 = vmul.f32 1.442695, %v1005_v37  ;;  %v1015_v48 = vsel %vm783_vm4, %v2042_v50, 0.0 }
 0x406   : > { %1016 = vadd.xlane.f32.xlu1 %v1015_v48  ;;  %v1002_v53 = vpop.xlane.xlu1 %1001 }
 0x407   : > { %2045 = vpow2.f32 %v1011_v51  ;;  %v1006_v54 = vsub.f32 %v990_v35, %v1002_v53  ;;  %v1382_v35 = vsel %vm1044_vm6, %v1239_v32, 0 }
 0x409   : > { %v1013_v55 = vmul.f32 1.442695, %v1006_v54 }
 0x40a   : > { %v1089_v57 = vpop.permute.xlu1 %1088 }
 0x40b   : > { %2047 = vpow2.f32 %v1013_v55  ;;  %v1094_v58 = vsel %vm1044_vm6, %v1089_v57, 0 }
 0x40c   : > { %v2044_v59 = vpop.eup %2043  ;;  %1907 = vmatpush3.bf16.msra.mxu1 %v1094_v58 }
 0x40d   : > { %v1018_v60 = vsel %vm783_vm4, %v2044_v59, 0.0  ;;  %1918 = vmatprep.subr.bf16.mxu1 %v2123_v0 }
 0x40e   : > { %1019 = vadd.xlane.f32.xlu1 %v1018_v60 }
 0x414   : > { %v2046_v61 = vpop.eup %2045 }
 0x415   : > { %v1021_v62 = vsel %vm783_vm4, %v2046_v61, 0.0 }
 0x416   : > { %1022 = vadd.xlane.f32.xlu0 %v1021_v62 }
 0x418   : > { %v2048_v63 = vpop.eup %2047 }
 0x419   : > { %v1024_v2 = vsel %vm783_vm4, %v2048_v63, 0.0 }
 0x41a   : > { %1025 = vadd.xlane.f32.xlu1 %v1024_v2 }
 0x42b   : > { %1136 = vrot.lane.b32.xlu1 %v2342_v56, %s2126_s25 }
 0x42c   : > { %1184 = vrot.lane.b32.xlu0 %v2339_v52, %s2126_s25  ;;  %s2065_s25 = sshll.u32 %s2127_s27, 4  ;;  %s2066_s25 = int_to_ptr.vmem [resolvable:$false] %s2065_s25 }
 0x42d   : > { %s2067_s1 = scalar_lea.vmem %s2066_s25, 256  ;;  %p2068_p0 = scmp.lt.s32.totalorder %s2515_s18, %s2066_s25 }
 0x42e   : > { %p2069_p1 = scmp.lt.s32.totalorder %s2067_s1, %s2061_s21 }
 0x430   : > { %p2070_p2 = por %p2069_p1, %p2068_p0 }
 0x432   : > { %p2071_p3 = pnand %p2070_p2, %p2064_p13 }
 0x48f   : > { %v1017_v3 = vpop.xlane.xlu1 %1016 }
 0x490   : > { %2049 = vrcp.f32 %v1017_v3 }
 0x497   : > { %v1020_v4 = vpop.xlane.xlu1 %1019 }
 0x498   : > { %2051 = vrcp.f32 %v1020_v4 }
 0x49d   : > { %v2050_v5 = vpop.eup %2049 }
 0x49e   : > { %v1031_v6 = vmul.f32 %v2050_v5, %v2042_v50 }
 0x49f   : > { %v1023_v7 = vpop.xlane.xlu0 %1022 }
 0x4a0   : > { %2053 = vrcp.f32 %v1023_v7  ;;  %v1035_v8 = vpack.c.bf16 %v1031_v6, %v1031_v6  ;;  %v1776_v7 = vld [vmem:[%s2562_s7] ss:$0 sm:$0xff] }
 0x4a2   : > { %1903 = vmatmul.mubr.msk.bf16.vlgmr.msra.gmra.mxu0 %vm783_vm4, %v1035_v8 }
 0x4a3   : > { %v1026_v9 = vpop.xlane.xlu1 %1025  ;;  %1914 = vmatprep.mubr.msk.bf16.mxu0 %vm2124_vm1, %v2123_v0  ;;  %v1185_v11 = vpop.permute.xlu0 %1184 }
 0x4a4   : > { %2055 = vrcp.f32 %v1026_v9  ;;  %v1190_v14 = vsel %vm1044_vm6, %v1185_v11, 0 }
 0x4a5   : > { %v2052_v56 = vpop.eup %2051 }
 0x4a6   : > { %v1032_v10 = vmul.f32 %v2052_v56, %v2044_v59 }
 0x4a7   : > { %v1137_v52 = vpop.permute.xlu1 %1136 }
 0x4a8   : > { %v1142_v12 = vsel %vm1044_vm6, %v1137_v52, 0  ;;  %v1036_v13 = vpack.c.bf16 %v1032_v10, %v1032_v10 }
 0x4a9   : > { %1913 = vmatpush3.bf16.msra.mxu0 %v1142_v12 }
 0x4aa   : > { %1909 = vmatmul.mubr.msk.bf16.vlgmr.msra.gmra.mxu1 %vm783_vm4, %v1036_v13  ;;  %1924 = vmatprep.subr.bf16.mxu0 %v2123_v0 }
 0x4ab   : > { %1919 = vmatpush3.bf16.msra.mxu1 %v1190_v14  ;;  %1920 = vmatprep.mubr.msk.bf16.mxu1 %vm2124_vm1, %v2123_v0 }
 0x4ac   : > { %1930 = vmatprep.subr.bf16.mxu1 %v2123_v0 }
 0x4ad   : > { %v2054_v15 = vpop.eup %2053 }
 0x4ae   : > { %v1033_v16 = vmul.f32 %v2054_v15, %v2046_v61 }
 0x4b0   : > { %v1037_v17 = vpack.c.bf16 %v1033_v16, %v1033_v16 }
 0x4b1   : > { %v2056_v18 = vpop.eup %2055 }
 0x4b2   : > { %1915 = vmatmul.mubr.msk.bf16.vlgmr.msra.gmra.mxu0 %vm783_vm4, %v1037_v17  ;;  %v1034_v19 = vmul.f32 %v2056_v18, %v2048_v63 }
 0x4b3   : > { %1926 = vmatprep.mubr.msk.bf16.mxu0 %vm2124_vm1, %v2123_v0  ;;  %1925 = vmatpush3.bf16.msra.mxu0 %v1244_v22  ;;  %v2031_v22 = vld [vmem:[%s2567_s12 + $0x28] sm:$0xff]  }
 0x4b4   : > { %v1038_v20 = vpack.c.bf16 %v1034_v19, %v1034_v19  ;;  %1936 = vmatprep.subr.bf16.mxu0 %v2123_v0  ;;  %v2027_v19 = vld [vmem:[%s2565_s10 + $0x8] sm:$0xff]  }
 0x4b6   : > { %1921 = vmatmul.mubr.msk.bf16.vlgmr.msra.gmra.mxu1 %vm783_vm4, %v1038_v20  ;;  %v2029_v20 = vld [vmem:[%s2567_s12 + $0x38] sm:$0xff]  }
 0x4b7   : > { %1932 = vmatprep.mubr.msk.bf16.mxu1 %vm2124_vm1, %v2123_v0  ;;  %1931 = vmatpush3.bf16.msra.mxu1 %v1290_v24  ;;  %v2033_v24 = vld [vmem:[%s2567_s12 + $0x18] sm:$0xff]  }
 0x4b8   : > { %1942 = vmatprep.subr.bf16.mxu1 %v2123_v0 }
 0x562   : > { %v1082_v26 = vpop.f32.mrf.mxu0 }
 0x563   : > { %v1232_v27 = vpack.c.bf16 %v1082_v26, %v1082_v26 }
 0x564   : > { %v1904_v29 = vpop.f32.mrf.mxu0 }
 0x565   : > { %1927 = vmatmul.mubr.msk.bf16.vlgmr.msra.gmra.mxu0 %vm783_vm4, %v1232_v27 }
 0x566   : > { %v1085_v30 = vpop.f32.mrf.mxu0  ;;  %1937 = vmatpush3.bf16.msra.mxu0 %v1336_v28  ;;  %1938 = vmatprep.mubr.msk.bf16.mxu0 %vm2124_vm1, %v2123_v0 }
 0x567   : > { %1948 = vmatprep.subr.bf16.mxu0 %v2123_v0 }
 0x568   : > { %v1905_v31 = vpop.f32.mrf.mxu0 }
 0x56a   : > { %v1130_v33 = vpop.f32.mrf.mxu1 }
 0x56b   : > { %v1233_v34 = vpack.c.bf16 %v1130_v33, %v1130_v33 }
 0x56c   : > { %v1910_v36 = vpop.f32.mrf.mxu1 }
 0x56d   : > { %1933 = vmatmul.mubr.msk.bf16.vlgmr.msra.gmra.mxu1 %vm783_vm4, %v1233_v34  ;;  %v1777_v34 = vld [vmem:[%s2563_s8] ss:$0 sm:$0xff] }
 0x56e   : > { %v1133_v38 = vpop.f32.mrf.mxu1  ;;  %1943 = vmatpush3.bf16.msra.mxu1 %v1382_v35  ;;  %1944 = vmatprep.mubr.msk.bf16.mxu1 %vm2124_vm1, %v2123_v0 }
 0x56f   : > { %1956 = vmatprep.subr.bf16.mxu1 %v2123_v0  ;;  %v1778_v38 = vld [vmem:[%s2564_s9] ss:$0 sm:$0xff] }
 0x570   : > { %v1911_v39 = vpop.f32.mrf.mxu1 }
 0x572   : > { %v1178_v40 = vpop.f32.mrf.mxu0 }
 0x573   : > { %v1234_v41 = vpack.c.bf16 %v1178_v40, %v1178_v40 }
 0x574   : > { %v1916_v42 = vpop.f32.mrf.mxu0 }
 0x575   : > { %1939 = vmatmul.mubr.msk.bf16.vlgmr.msra.gmra.mxu0 %vm783_vm4, %v1234_v41  ;;  %v2035_v42 = vld [vmem:[%s2567_s12 + $0x8] sm:$0xff]  }
 0x576   : > { %v1181_v43 = vpop.f32.mrf.mxu0  ;;  %v1226_v44 = vpop.f32.mrf.mxu1  ;;  %1952 = vmatprep.mubr.msk.bf16.mxu0 %vm2124_vm1, %v2123_v0  ;;  %1949 = vmatpush3.bf16.msra.mxu0 %v2027_v19 }
 0x577   : > { %v1235_v45 = vpack.c.bf16 %v1226_v44, %v1226_v44  ;;  %1950 = vmatprep.subr.bf16.mxu0 %v2123_v0  ;;  %v2036_v43 = vld [vmem:[%s2567_s12] sm:$0xff]  }
 0x578   : > { %v1917_v46 = vpop.f32.mrf.mxu0  ;;  %v1922_v47 = vpop.f32.mrf.mxu1  ;;  %v1779_v44 = vld [vmem:[%s2566_s11] ss:$0 sm:$0xff] }
 0x579   : > { %1945 = vmatmul.mubr.msk.bf16.vlgmr.msra.gmra.mxu1 %vm783_vm4, %v1235_v45 }
 0x57a   : > { %v1229_v49 = vpop.f32.mrf.mxu1  ;;  %1972 = vmatprep.mubr.msk.bf16.mxu1 %vm2124_vm1, %v2123_v0  ;;  %1957 = vmatpush3.bf16.msra.mxu1 %v2029_v20 }
 0x57b   : > { %1958 = vmatprep.subr.bf16.mxu1 %v2123_v0 }
 0x57c   : > { %v1923_v37 = vpop.f32.mrf.mxu1 }
 0x57e   : > { %1959 = vmatpush3.bf16.msra.mxu1 %v2030_v21 }
 0x57f   : > { %1960 = vmatprep.subr.bf16.mxu1 %v2123_v0 }
 0x582   : > { %1961 = vmatpush3.bf16.msra.mxu1 %v2031_v22 }
 0x583   : > { %1962 = vmatprep.subr.bf16.mxu1 %v2123_v0 }
 0x586   : > { %1963 = vmatpush3.bf16.msra.mxu1 %v2032_v23 }
 0x587   : > { %1964 = vmatprep.subr.bf16.mxu1 %v2123_v0 }
 0x58a   : > { %1965 = vmatpush3.bf16.msra.mxu1 %v2033_v24 }
 0x58b   : > { %1966 = vmatprep.subr.bf16.mxu1 %v2123_v0 }
 0x58e   : > { %1967 = vmatpush3.bf16.msra.mxu1 %v2034_v25 }
 0x58f   : > { %1968 = vmatprep.subr.bf16.mxu1 %v2123_v0 }
 0x592   : > { %1969 = vmatpush3.bf16.msra.mxu1 %v2035_v42 }
 0x593   : > { %1970 = vmatprep.subr.bf16.mxu1 %v2123_v0  ;;  %v1783_v0 = vld [vmem:[%s2568_s13] ss:$0 sm:$0xff] }
 0x596   : > { %1971 = vmatpush3.bf16.msra.mxu1 %v2036_v43 }
 0x625   : > { %v1280_v50 = vpop.f32.mrf.mxu0 }
 0x626   : > { %v1424_v61 = vsel %vm482_vm0, %v1280_v50, 0.0 }
 0x627   : > { %v1928_v51 = vpop.f32.mrf.mxu0 }
 0x629   : > { %v1283_v48 = vpop.f32.mrf.mxu0 }
 0x62b   : > { %v1929_v53 = vpop.f32.mrf.mxu0 }
 0x62d   : > { %v1326_v54 = vpop.f32.mrf.mxu1 }
 0x62e   : > { %v1425_v59 = vsel %vm482_vm0, %v1326_v54, 0.0 }
 0x62f   : > { %v1934_v55 = vpop.f32.mrf.mxu1  ;;  %v1426_v63 = vadd.f32 %v1425_v59, %v1424_v61 }
 0x631   : > { %v1329_v57 = vpop.f32.mrf.mxu1 }
 0x633   : > { %v1935_v58 = vpop.f32.mrf.mxu1 }
 0x635   : > { %v1372_v60 = vpop.f32.mrf.mxu0 }
 0x636   : > { %v1427_v62 = vsel %vm482_vm0, %v1372_v60, 0.0 }
 0x637   : > { %v1940_v2 = vpop.f32.mrf.mxu0  ;;  %v1428_v3 = vadd.f32 %v1427_v62, %v1426_v63 }
 0x639   : > { %v1375_v4 = vpop.f32.mrf.mxu0  ;;  %v1418_v5 = vpop.f32.mrf.mxu1 }
 0x63a   : > { %v1429_v6 = vsel %vm482_vm0, %v1418_v5, 0.0 }
 0x63b   : > { %v1430_v8 = vadd.f32 %v1429_v6, %v1428_v3  ;;  %v1941_v9 = vpop.f32.mrf.mxu0  ;;  %v1946_v56 = vpop.f32.mrf.mxu1 }
 0x63d   : > { %v1438_v10 = vadd.f32 %v1776_v7, %v1430_v8  ;;  %v1421_v11 = vpop.f32.mrf.mxu1 }
 0x63f   : > { %v1947_v52 = vpop.f32.mrf.mxu1  ;;  %v2450_v12 = vadd.f32 %v1438_v10, %v2261_v1  ;;  %v2028_v1 = vld [vmem:[%s2565_s10] sm:$0xff]  }
 0x640   : > { %1951 = vmatpush3.bf16.msra.mxu0 %v2028_v1 }
 0x641   : > { %v1442_v13 = vsel %vm482_vm0, %v2450_v12, 0.0 }
 0x642   : > { %1443 = vadd.xlane.f32.xlu1 %v1442_v13 }
 0x6cb   : > { %v1444_v14 = vpop.xlane.xlu1 %1443 }
 0x6cc   : > { %v1445_v15 = vmul.f32 0.03125, %v1444_v14 }
 0x6ce   : > { %v1446_v16 = vsub.f32 %v2450_v12, %v1445_v15 }
 0x6d0   : > { %v1447_v17 = vmul.f32 %v1446_v16, %v1446_v16  ;;  %v1467_v35 = vmul.f32 %v1777_v34, %v1446_v16 }
 0x6d2   : > { %v1448_v18 = vsel %vm482_vm0, %v1447_v17, 0.0 }
 0x6d3   : > { %1449 = vadd.xlane.f32.xlu0 %v1448_v18 }
 0x75c   : > { %v1450_v26 = vpop.xlane.xlu0 %1449 }
 0x75d   : > { %v1451_v27 = vmul.f32 0.032258064, %v1450_v26 }
 0x75f   : > { %2057 = vrsqrt.f32 %v1451_v27  ;;  %vm1454_vm7 = vcmp.eq.f32.partialorder %v1451_v27, inf  ;;  %v1457_v30 = vand.u32 2147483648, %v1451_v27  ;;  %vm1456_vm8 = vcmp.eq.f32.partialorder %v1451_v27, 0.0 }
 0x76c   : > { %v2058_v28 = vpop.eup %2057 }
 0x76d   : > { %v1453_v29 = vmul.f32 %v2058_v28, %v1451_v27 }
 0x76f   : > { %v1455_v31 = vsel %vm1454_vm7, %v1451_v27, %v1453_v29 }
 0x770   : > { %v1458_v32 = vsel %vm1456_vm8, %v1457_v30, %v1455_v31 }
 0x771   : > { %v1459_v33 = vadd.f32 1e-06, %v1458_v32 }
 0x773   : > { %2059 = vrcp.f32 %v1459_v33 }
 0x780   : > { %v2060_v36 = vpop.eup %2059 }
 0x781   : > { %v1468_v39 = vmul.f32 %v2060_v36, %v1467_v35 }
 0x783   : > { %v1475_v40 = vadd.f32 %v1778_v38, %v1468_v39 }
 0x785   : > { %v1476_v41 = vpack.c.bf16 %v1475_v40, %v1475_v40 }
 0x787   : > { %1953 = vmatmul.mubr.msk.bf16.vlgmr.msra.gmra.mxu0 %vm482_vm0, %v1476_v41 }
 0x847   : > { %v1537_v45 = vpop.f32.mrf.mxu0 }
 0x848   : > { %v1538_v46 = vadd.f32 %v1779_v44, %v1537_v45 }
 0x849   : > { %v1954_v47 = vpop.f32.mrf.mxu0 }
 0x84a   : > { %v1543_v49 = vmax.f32 %v1538_v46, 0.0 }
 0x84b   : > { %v1540_v37 = vpop.f32.mrf.mxu0 }
 0x84c   : > { %v1544_v50 = vpack.c.bf16 %v1543_v49, %v1543_v49 }
 0x84d   : > { %v1955_v51 = vpop.f32.mrf.mxu0 }
 0x84e   : > { %1973 = vmatmul.mubr.bf16.vlgmr.msra.gmra.mxu1 %v1544_v50 }
 0x90e   : > { %v1650_v48 = vpop.f32.mrf.mxu1 }
 0x90f   : > { %v1651_v53 = vadd.f32 %v1783_v0, %v1650_v48 }
 0x910   : > { %v1974_v54 = vpop.f32.mrf.mxu1 }
 0x911   : > { %v1656_v55 = vadd.f32 %v1651_v53, %v2450_v12 }
 0x912   : > { %v1653_v57 = vpop.f32.mrf.mxu1 }
 0x913   : > { %1657 = vst.msk [vmem:[%s469_s28] sm:$0xff] %vm482_vm0, %v1656_v55 }
 0x914   : > { %v1975_v58 = vpop.f32.mrf.mxu1 }
 0x915   : > { %2074 = shalt.err (!%p2071_p3)
}
 0x916   : > { %s2075_s26 = scalar_lea.hbm %s2513_s2, 128  ;;  %s2079_s20 = scalar_lea.hbm %s2569_s14, 256 }
 0x917   : > { %p2076_p4 = scmp.ne.s32.totalorder %s2513_s2, %s2075_s26  ;;  %p2080_p9 = scmp.lt.s32.totalorder %s2513_s2, %s2569_s14 }
 0x918   : > { %p2081_p10 = scmp.lt.s32.totalorder %s2079_s20, %s2075_s26 }
 0x919   : > { %p2077_p7 = pnand %p2076_p4, %p2241_p5 }
 0x91a   : > { %p2082_p11 = por %p2081_p10, %p2080_p9 }
 0x91b   : > { %p2078_p8 = pneg %p2077_p7 }
 0x91d   : > { %p2083_p12 = pnand %p2082_p11, %p2078_p8 }
 0x91f   : > { %2086 = shalt.err (!%p2083_p12)
}
 0x920   : > { %1976 = dma.vmem_to_hbm [thread:$0]  (%p2241_p5), %s2515_s18, 128, %s2513_s2, %s1659_s17  }
 0x921 PF: > { %p1982_p13 = scmp.ge.s32.totalorder %s2121_s16, 2  ;;  %s1684_s21 = sand.u32 1, %s2109_s29  }
 0x922   : > { %s1685_s3 = scalar_lea.sflag [#allocation3], %s1684_s21 }
 0x923   : > { %p1979_p0 = pnand %p1982_p13, %p2245_p6 }
 0x925   : > { %p1980_p1 = pneg %p1979_p0 }
 0x927   : > { %2104 = dma.done.wait (%p1980_p1), %s1685_s3, 128  }
 0x928   : > { %2106 = vsyncadd (%p1980_p1), %s1685_s3, 4294967168  ;;  %p24_p2 = scmp.ge.s32.totalorder %s2228_s19, 4   ;;  %s2580_s29 = smov %s2113_s30 }
 0x929   : > { %s2581_s30 = smov %s2117_s15  ;;  %s2582_s15 = smov %s2239_s22 }
 0x92a   : > { %s2583_s16 = smov %s2228_s19  ;;  %26 = sbr.rel (!%p24_p2) target bundleno = 8 (0x8), region = 114 }
 0x92f   :  { %1690 = vsyncpa [#allocation3], 1 }
 0x930   :  { %1692 = vsyncpa [#allocation3 + $0x1], 1 }

</bundles_post_ra>
